<compile_context>
chip_gen: v7x
topology: tpu7x:2x2x1
jax: 0.10.0
libtpu: 0.0.40
codegen_flags: <defaults>
</compile_context>

<pallas_src>
import math
import functools

import jax
import jax.numpy as jnp
from jax.experimental import pallas as pl
from jax.experimental.pallas import tpu as pltpu


def _global_fusion_kernel(*refs, nhead, have_pos, have_mask):
    it = iter(refs)
    src_ref = next(it)
    pos_ref = next(it) if have_pos else None
    key_ref = next(it)
    mask_ref = next(it) if have_mask else None
    wq_ref = next(it)
    wkv_ref = next(it)
    wo_ref = next(it)
    bq_ref = next(it)
    bkv_ref = next(it)
    bo_ref = next(it)
    out_ref = next(it)

    src = src_ref[...]                       # (Bb, L, E)
    key = key_ref[...]                       # (Bb, S, E)
    Bb, L, E = src.shape
    S = key.shape[1]
    hd = E // nhead

    if have_pos:
        q_in = src + pos_ref[...]            # with_pos_embed
    else:
        q_in = src

    # ---- projections: full-lane-width 2-D matmuls.  Weights are already
    #      transposed in the wrapper (x @ W), the softmax scale is folded
    #      into wq/bq, and K|V are fused into a single (E, 2E) weight. ----
    q2 = q_in.reshape(Bb * L, E)
    k2 = key.reshape(Bb * S, E)
    q = jnp.dot(q2, wq_ref[...], preferred_element_type=jnp.float32) + bq_ref[0]
    kv = jnp.dot(k2, wkv_ref[...], preferred_element_type=jnp.float32) + bkv_ref[0]
    q3 = q.reshape(Bb, L, E)
    kv3 = kv.reshape(Bb, S, 2 * E)

    mask = mask_ref[...] if have_mask else None       # (Bb, 1, S) additive
    wo_t = wo_ref[...]                                # (E, E) pre-transposed

    # ---- per-head attention, batched over the batch block.  The output
    #      projection is accumulated per head, so there is no concatenate and
    #      at most one (Bb, L, S) score block is live at a time. ----
    src2 = jnp.zeros((Bb * L, E), jnp.float32)
    for h in range(nhead):                            # nhead is small & static
        lo = h * hd
        qh = q3[:, :, lo:lo + hd]                     # (Bb, L, hd)
        kh = kv3[:, :, lo:lo + hd]                    # (Bb, S, hd)
        vh = kv3[:, :, E + lo:E + lo + hd]            # (Bb, S, hd)

        # QK^T: contract the last dims directly (no materialized k.T).
        s = jnp.einsum('bld,bsd->bls', qh, kh,
                       preferred_element_type=jnp.float32)    # (Bb, L, S)
        if have_mask:
            s = s + mask                              # broadcast over L
        m = jnp.max(s, axis=-1, keepdims=True)
        p = jnp.exp(s - m)
        denom = jnp.sum(p, axis=-1, keepdims=True)
        attn = p * pl.reciprocal(denom, approx=False)  # approx=True if tol allows

        ctx = jnp.einsum('bls,bsd->bld', attn.astype(vh.dtype), vh,
                         preferred_element_type=jnp.float32)  # (Bb, L, hd)
        # head h's contribution to the output projection (sublane-aligned slice)
        src2 = src2 + jnp.dot(ctx.reshape(Bb * L, hd), wo_t[lo:lo + hd, :],
                              preferred_element_type=jnp.float32)
    src2 = src2 + bo_ref[0]

    out_ref[...] = (src.astype(jnp.float32)
                    * src2.reshape(Bb, L, E)).astype(out_ref.dtype)


def _pick_block_n(n, cap=8):
    """Largest divisor of n that is <= cap (batch elements per grid step)."""
    bb = 1
    for d in range(1, min(n, cap) + 1):
        if n % d == 0:
            bb = d
    return bb


def global_fusion_forward(src, key, params, *, nhead,
                          key_padding_mask=None, pos=None,
                          block_n=None, compute_dtype=jnp.float32):
    """src: (L, N, E), key: (S, N, E) -- PyTorch nn.MultiheadAttention
    convention (batch_first=False).  key_padding_mask: optional bool (N, S),
    True = masked out.  pos: optional (L, N, E).  Returns (L, N, E)."""
    L, N, E = src.shape
    S = key.shape[0]
    wq, wk, wv, wo, bq, bk, bv, bo = params
    hd = E // nhead
    scale = 1.0 / math.sqrt(hd)

    # ---- grid-invariant weight prep (trace time): pre-transpose, fold the
    #      softmax scale into Wq/bq, fuse K|V. ----
    wq_t = (jnp.asarray(wq).T * scale).astype(compute_dtype)              # (E, E)
    wkv_t = jnp.concatenate([jnp.asarray(wk).T, jnp.asarray(wv).T],
                            axis=1).astype(compute_dtype)                 # (E, 2E)
    wo_t = jnp.asarray(wo).T.astype(compute_dtype)                        # (E, E)
    bq_s = (jnp.asarray(bq).reshape(1, E) * scale).astype(jnp.float32)
    bkv = jnp.concatenate([jnp.asarray(bk).reshape(1, E),
                           jnp.asarray(bv).reshape(1, E)],
                          axis=1).astype(jnp.float32)                     # (1, 2E)
    bo_r = jnp.asarray(bo).reshape(1, E).astype(jnp.float32)

    # ---- activations: batch-first layout for the kernel ----
    src_b = jnp.transpose(src, (1, 0, 2)).astype(compute_dtype)           # (N, L, E)
    key_b = jnp.transpose(key, (1, 0, 2)).astype(compute_dtype)           # (N, S, E)

    have_pos = pos is not None
    have_mask = key_padding_mask is not None

    bb = block_n if block_n is not None else _pick_block_n(N)
    assert N % bb == 0, "block_n must divide the batch size"
    grid = (N // bb,)

    args, in_specs = [], []

    def add(arr, spec):
        args.append(arr)
        in_specs.append(spec)

    def batched3(d1, d2):
        return pl.BlockSpec((bb, d1, d2), lambda b: (b, 0, 0))

    def const2(r, c):
        return pl.BlockSpec((r, c), lambda b: (0, 0))

    add(src_b, batched3(L, E))
    if have_pos:
        pos_b = jnp.transpose(pos, (1, 0, 2)).astype(compute_dtype)
        add(pos_b, batched3(L, E))
    add(key_b, batched3(S, E))
    if have_mask:
        mask = jnp.where(key_padding_mask, -1e9, 0.0).astype(jnp.float32)
        add(mask.reshape(N, 1, S), batched3(1, S))
    add(wq_t, const2(E, E))
    add(wkv_t, const2(E, 2 * E))
    add(wo_t, const2(E, E))
    add(bq_s, const2(1, E))
    add(bkv, const2(1, 2 * E))
    add(bo_r, const2(1, E))

    kernel = functools.partial(_global_fusion_kernel, nhead=nhead,
                               have_pos=have_pos, have_mask=have_mask)

    out_b = pl.pallas_call(
        kernel,
        out_shape=jax.ShapeDtypeStruct((N, L, E), src.dtype),
        grid=grid,
        in_specs=in_specs,
        out_specs=pl.BlockSpec((bb, L, E), lambda b: (b, 0, 0)),
        compiler_params=pltpu.CompilerParams(
            dimension_semantics=("parallel",)),
    )(*args)

    return jnp.transpose(out_b, (1, 0, 2))               # back to (L, N, E)


def _reference_forward(src, key, params, *, nhead,
                       key_padding_mask=None, pos=None):
    """Pure-JAX reference of nn.MultiheadAttention + gate (for verification)."""
    L, N, E = src.shape
    S = key.shape[0]
    hd = E // nhead
    wq, wk, wv, wo, bq, bk, bv, bo = params

    q_in = src if pos is None else src + pos
    qb = jnp.transpose(q_in, (1, 0, 2))
    kb = jnp.transpose(key, (1, 0, 2))
    q = qb @ wq.T + bq[0]
    k = kb @ wk.T + bk[0]
    v = kb @ wv.T + bv[0]
    q = q / math.sqrt(hd)
    q = q.reshape(N, L, nhead, hd).transpose(0, 2, 1, 3)
    k = k.reshape(N, S, nhead, hd).transpose(0, 2, 1, 3)
    v = v.reshape(N, S, nhead, hd).transpose(0, 2, 1, 3)
    scores = jnp.einsum('nhld,nhsd->nhls', q, k)
    if key_padding_mask is not None:
        add = jnp.where(key_padding_mask, -1e9, 0.0)[:, None, None, :]
        scores = scores + add
    attn = jax.nn.softmax(scores, axis=-1)
    ctx = jnp.einsum('nhls,nhsd->nhld', attn, v)
    ctx = ctx.transpose(0, 2, 1, 3).reshape(N, L, E)
    src2 = ctx @ wo.T + bo[0]
    src2 = jnp.transpose(src2, (1, 0, 2))
    return src * src2


if __name__ == "__main__":
    # Small, deterministic example shapes.
    L, S, N, E, NHEAD = 8, 8, 2, 32, 4

    key_rng = jax.random.PRNGKey(0)
    ks = jax.random.split(key_rng, 12)

    src = jax.random.normal(ks[0], (L, N, E), jnp.float32)
    key_t = jax.random.normal(ks[1], (S, N, E), jnp.float32)
    pos = jax.random.normal(ks[2], (L, N, E), jnp.float32) * 0.1

    # nn.MultiheadAttention params: in_proj split into q/k/v, out_proj (E, E).
    wq = jax.random.normal(ks[3], (E, E), jnp.float32) * (1.0 / math.sqrt(E))
    wk = jax.random.normal(ks[4], (E, E), jnp.float32) * (1.0 / math.sqrt(E))
    wv = jax.random.normal(ks[5], (E, E), jnp.float32) * (1.0 / math.sqrt(E))
    wo = jax.random.normal(ks[6], (E, E), jnp.float32) * (1.0 / math.sqrt(E))
    bq = jax.random.normal(ks[7], (1, E), jnp.float32) * 0.01
    bk = jax.random.normal(ks[8], (1, E), jnp.float32) * 0.01
    bv = jax.random.normal(ks[9], (1, E), jnp.float32) * 0.01
    bo = jax.random.normal(ks[10], (1, E), jnp.float32) * 0.01
    params = (wq, wk, wv, wo, bq, bk, bv, bo)

    # key_padding_mask: (N, S) bool, True = padded/ignored.
    key_padding_mask = jnp.zeros((N, S), jnp.bool_).at[1, -2:].set(True)

    # Path 1: with pos + padding mask.
    out = global_fusion_forward(src, key_t, params, nhead=NHEAD,
                                key_padding_mask=key_padding_mask, pos=pos)
    out = jax.block_until_ready(out)
    ref = _reference_forward(src, key_t, params, nhead=NHEAD,
                             key_padding_mask=key_padding_mask, pos=pos)
    assert out.shape == (L, N, E)
    assert jnp.allclose(out, ref, atol=1e-4, rtol=1e-4), "mismatch vs reference"

    # Path 2: specialized kernel (no pos, no mask -> no zero-array DMA).
    out2 = global_fusion_forward(src, key_t, params, nhead=NHEAD)
    out2 = jax.block_until_ready(out2)
    ref2 = _reference_forward(src, key_t, params, nhead=NHEAD)
    assert jnp.allclose(out2, ref2, atol=1e-4, rtol=1e-4), "mismatch (no pos/mask)"

    print("KERNEL_OK")
</pallas_src>

<mosaic_0001>
module attributes {stable_mosaic.version = 11 : i64} {
  func.func @_global_fusion_kernel(%arg0: i32, %arg1: memref<2x8x32xf32, #tpu.memory_space<vmem>>, %arg2: memref<2x8x32xf32, #tpu.memory_space<vmem>>, %arg3: memref<2x8x32xf32, #tpu.memory_space<vmem>>, %arg4: memref<2x1x8xf32, #tpu.memory_space<vmem>>, %arg5: memref<32x32xf32, #tpu.memory_space<vmem>>, %arg6: memref<32x64xf32, #tpu.memory_space<vmem>>, %arg7: memref<32x32xf32, #tpu.memory_space<vmem>>, %arg8: memref<1x32xf32, #tpu.memory_space<vmem>>, %arg9: memref<1x64xf32, #tpu.memory_space<vmem>>, %arg10: memref<1x32xf32, #tpu.memory_space<vmem>>, %arg11: memref<2x8x32xf32, #tpu.memory_space<vmem>>) attributes {dimension_semantics = [#tpu.dimension_semantics<parallel>], iteration_bounds = array<i64: 1>, scalar_prefetch = 0 : i64, scratch_operands = 0 : i64, tpu.core_type = #tpu.core_type<tc>, window_params = [{transform_indices = @transform_0, window_bounds = array<i64: 2, 8, 32>}, {transform_indices = @transform_1, window_bounds = array<i64: 2, 8, 32>}, {transform_indices = @transform_2, window_bounds = array<i64: 2, 8, 32>}, {transform_indices = @transform_3, window_bounds = array<i64: 2, 1, 8>}, {pipeline_mode = #tpu.pipeline_mode<synchronous>, transform_indices = @transform_4, window_bounds = array<i64: 32, 32>}, {pipeline_mode = #tpu.pipeline_mode<synchronous>, transform_indices = @transform_5, window_bounds = array<i64: 32, 64>}, {pipeline_mode = #tpu.pipeline_mode<synchronous>, transform_indices = @transform_6, window_bounds = array<i64: 32, 32>}, {pipeline_mode = #tpu.pipeline_mode<synchronous>, transform_indices = @transform_7, window_bounds = array<i64: 1, 32>}, {pipeline_mode = #tpu.pipeline_mode<synchronous>, transform_indices = @transform_8, window_bounds = array<i64: 1, 64>}, {pipeline_mode = #tpu.pipeline_mode<synchronous>, transform_indices = @transform_9, window_bounds = array<i64: 1, 32>}, {transform_indices = @transform_10, window_bounds = array<i64: 2, 8, 32>}]} {
    %c0 = arith.constant 0 : index
    %c0_0 = arith.constant 0 : index
    %c0_1 = arith.constant 0 : index
    %0 = vector.load %arg1[%c0, %c0_0, %c0_1] : memref<2x8x32xf32, #tpu.memory_space<vmem>>, vector<2x8x32xf32>
    %c0_2 = arith.constant 0 : index
    %c0_3 = arith.constant 0 : index
    %c0_4 = arith.constant 0 : index
    %1 = vector.load %arg3[%c0_2, %c0_3, %c0_4] : memref<2x8x32xf32, #tpu.memory_space<vmem>>, vector<2x8x32xf32>
    %c0_5 = arith.constant 0 : index
    %c0_6 = arith.constant 0 : index
    %c0_7 = arith.constant 0 : index
    %2 = vector.load %arg2[%c0_5, %c0_6, %c0_7] : memref<2x8x32xf32, #tpu.memory_space<vmem>>, vector<2x8x32xf32>
    %3 = arith.addf %0, %2 : vector<2x8x32xf32>
    %4 = vector.shape_cast %3 : vector<2x8x32xf32> to vector<16x32xf32>
    %5 = vector.shape_cast %1 : vector<2x8x32xf32> to vector<16x32xf32>
    %c0_8 = arith.constant 0 : index
    %c0_9 = arith.constant 0 : index
    %6 = vector.load %arg5[%c0_8, %c0_9] : memref<32x32xf32, #tpu.memory_space<vmem>>, vector<32x32xf32>
    %cst = arith.constant dense<0.000000e+00> : vector<16x32xf32>
    %7 = tpu.matmul %4, %6, %cst {dimension_numbers = #tpu.dot_dimension_numbers<[1], [0], [0], [1], [0, 0, 1, 1], [], []>} : vector<16x32xf32>, vector<32x32xf32>, vector<16x32xf32> -> vector<16x32xf32>
    %c0_10 = arith.constant 0 : index
    %c0_11 = arith.constant 0 : index
    %8 = vector.load %arg8[%c0_10, %c0_11] : memref<1x32xf32, #tpu.memory_space<vmem>>, vector<1x32xf32>
    %9 = vector.shape_cast %8 : vector<1x32xf32> to vector<32xf32>
    %10 = vector.shape_cast %9 : vector<32xf32> to vector<1x32xf32>
    %11 = vector.broadcast %10 : vector<1x32xf32> to vector<16x32xf32>
    %12 = arith.addf %7, %11 : vector<16x32xf32>
    %c0_12 = arith.constant 0 : index
    %c0_13 = arith.constant 0 : index
    %13 = vector.load %arg6[%c0_12, %c0_13] : memref<32x64xf32, #tpu.memory_space<vmem>>, vector<32x64xf32>
    %cst_14 = arith.constant dense<0.000000e+00> : vector<16x64xf32>
    %14 = tpu.matmul %5, %13, %cst_14 {dimension_numbers = #tpu.dot_dimension_numbers<[1], [0], [0], [1], [0, 0, 1, 1], [], []>} : vector<16x32xf32>, vector<32x64xf32>, vector<16x64xf32> -> vector<16x64xf32>
    %c0_15 = arith.constant 0 : index
    %c0_16 = arith.constant 0 : index
    %15 = vector.load %arg9[%c0_15, %c0_16] : memref<1x64xf32, #tpu.memory_space<vmem>>, vector<1x64xf32>
    %16 = vector.shape_cast %15 : vector<1x64xf32> to vector<64xf32>
    %17 = vector.shape_cast %16 : vector<64xf32> to vector<1x64xf32>
    %18 = vector.broadcast %17 : vector<1x64xf32> to vector<16x64xf32>
    %19 = arith.addf %14, %18 : vector<16x64xf32>
    %20 = vector.shape_cast %12 : vector<16x32xf32> to vector<2x8x32xf32>
    %21 = vector.shape_cast %19 : vector<16x64xf32> to vector<2x8x64xf32>
    %c0_17 = arith.constant 0 : index
    %c0_18 = arith.constant 0 : index
    %c0_19 = arith.constant 0 : index
    %22 = vector.load %arg4[%c0_17, %c0_18, %c0_19] : memref<2x1x8xf32, #tpu.memory_space<vmem>>, vector<2x1x8xf32>
    %c0_20 = arith.constant 0 : index
    %c0_21 = arith.constant 0 : index
    %23 = vector.load %arg7[%c0_20, %c0_21] : memref<32x32xf32, #tpu.memory_space<vmem>>, vector<32x32xf32>
    %cst_22 = arith.constant 0.000000e+00 : f32
    %24 = vector.broadcast %cst_22 : f32 to vector<16x32xf32>
    %25 = vector.extract_strided_slice %20 {offsets = [0, 0, 0], sizes = [2, 8, 8], strides = [1, 1, 1]} : vector<2x8x32xf32> to vector<2x8x8xf32>
    %26 = vector.extract_strided_slice %21 {offsets = [0, 0, 0], sizes = [2, 8, 8], strides = [1, 1, 1]} : vector<2x8x64xf32> to vector<2x8x8xf32>
    %27 = vector.extract_strided_slice %21 {offsets = [0, 0, 32], sizes = [2, 8, 8], strides = [1, 1, 1]} : vector<2x8x64xf32> to vector<2x8x8xf32>
    "tpu.trace_start"() <{level = 10 : i32, message = "bld,bsd->bls"}> : () -> ()
    %cst_23 = arith.constant dense<0.000000e+00> : vector<2x8x8xf32>
    %28 = tpu.matmul %25, %26, %cst_23 {dimension_numbers = #tpu.dot_dimension_numbers<[2], [2], [1], [1], [0, 0, 0, 1, 1, 1], [0], [0]>} : vector<2x8x8xf32>, vector<2x8x8xf32>, vector<2x8x8xf32> -> vector<2x8x8xf32>
    "tpu.trace_stop"() : () -> ()
    %29 = vector.broadcast %22 : vector<2x1x8xf32> to vector<2x8x8xf32>
    %30 = arith.addf %28, %29 : vector<2x8x8xf32>
    %cst_24 = arith.constant dense<0xFF800000> : vector<2x8xf32>
    %31 = vector.multi_reduction <maximumf>, %30, %cst_24 [2] : vector<2x8x8xf32> to vector<2x8xf32>
    %32 = vector.shape_cast %31 : vector<2x8xf32> to vector<2x8x1xf32>
    %33 = vector.broadcast %32 : vector<2x8x1xf32> to vector<2x8x8xf32>
    %34 = arith.subf %30, %33 : vector<2x8x8xf32>
    %35 = math.exp %34 : vector<2x8x8xf32>
    %cst_25 = arith.constant dense<0.000000e+00> : vector<2x8xf32>
    %36 = vector.multi_reduction <add>, %35, %cst_25 [2] : vector<2x8x8xf32> to vector<2x8xf32>
    %37 = vector.shape_cast %36 : vector<2x8xf32> to vector<2x8x1xf32>
    %38 = tpu.reciprocal %37 : vector<2x8x1xf32> -> vector<2x8x1xf32>
    %39 = vector.broadcast %38 : vector<2x8x1xf32> to vector<2x8x8xf32>
    %40 = arith.mulf %35, %39 : vector<2x8x8xf32>
    "tpu.trace_start"() <{level = 10 : i32, message = "bls,bsd->bld"}> : () -> ()
    %cst_26 = arith.constant dense<0.000000e+00> : vector<2x8x8xf32>
    %41 = tpu.matmul %40, %27, %cst_26 {dimension_numbers = #tpu.dot_dimension_numbers<[2], [1], [1], [2], [0, 0, 0, 1, 1, 2], [0], [0]>} : vector<2x8x8xf32>, vector<2x8x8xf32>, vector<2x8x8xf32> -> vector<2x8x8xf32>
    "tpu.trace_stop"() : () -> ()
    %42 = vector.shape_cast %41 : vector<2x8x8xf32> to vector<16x8xf32>
    %43 = vector.extract_strided_slice %23 {offsets = [0, 0], sizes = [8, 32], strides = [1, 1]} : vector<32x32xf32> to vector<8x32xf32>
    %cst_27 = arith.constant dense<0.000000e+00> : vector<16x32xf32>
    %44 = tpu.matmul %42, %43, %cst_27 {dimension_numbers = #tpu.dot_dimension_numbers<[1], [0], [0], [1], [0, 0, 1, 1], [], []>} : vector<16x8xf32>, vector<8x32xf32>, vector<16x32xf32> -> vector<16x32xf32>
    %45 = arith.addf %24, %44 : vector<16x32xf32>
    %46 = vector.extract_strided_slice %20 {offsets = [0, 0, 8], sizes = [2, 8, 8], strides = [1, 1, 1]} : vector<2x8x32xf32> to vector<2x8x8xf32>
    %47 = vector.extract_strided_slice %21 {offsets = [0, 0, 8], sizes = [2, 8, 8], strides = [1, 1, 1]} : vector<2x8x64xf32> to vector<2x8x8xf32>
    %48 = vector.extract_strided_slice %21 {offsets = [0, 0, 40], sizes = [2, 8, 8], strides = [1, 1, 1]} : vector<2x8x64xf32> to vector<2x8x8xf32>
    "tpu.trace_start"() <{level = 10 : i32, message = "bld,bsd->bls"}> : () -> ()
    %cst_28 = arith.constant dense<0.000000e+00> : vector<2x8x8xf32>
    %49 = tpu.matmul %46, %47, %cst_28 {dimension_numbers = #tpu.dot_dimension_numbers<[2], [2], [1], [1], [0, 0, 0, 1, 1, 1], [0], [0]>} : vector<2x8x8xf32>, vector<2x8x8xf32>, vector<2x8x8xf32> -> vector<2x8x8xf32>
    "tpu.trace_stop"() : () -> ()
    %50 = vector.broadcast %22 : vector<2x1x8xf32> to vector<2x8x8xf32>
    %51 = arith.addf %49, %50 : vector<2x8x8xf32>
    %cst_29 = arith.constant dense<0xFF800000> : vector<2x8xf32>
    %52 = vector.multi_reduction <maximumf>, %51, %cst_29 [2] : vector<2x8x8xf32> to vector<2x8xf32>
    %53 = vector.shape_cast %52 : vector<2x8xf32> to vector<2x8x1xf32>
    %54 = vector.broadcast %53 : vector<2x8x1xf32> to vector<2x8x8xf32>
    %55 = arith.subf %51, %54 : vector<2x8x8xf32>
    %56 = math.exp %55 : vector<2x8x8xf32>
    %cst_30 = arith.constant dense<0.000000e+00> : vector<2x8xf32>
    %57 = vector.multi_reduction <add>, %56, %cst_30 [2] : vector<2x8x8xf32> to vector<2x8xf32>
    %58 = vector.shape_cast %57 : vector<2x8xf32> to vector<2x8x1xf32>
    %59 = tpu.reciprocal %58 : vector<2x8x1xf32> -> vector<2x8x1xf32>
    %60 = vector.broadcast %59 : vector<2x8x1xf32> to vector<2x8x8xf32>
    %61 = arith.mulf %56, %60 : vector<2x8x8xf32>
    "tpu.trace_start"() <{level = 10 : i32, message = "bls,bsd->bld"}> : () -> ()
    %cst_31 = arith.constant dense<0.000000e+00> : vector<2x8x8xf32>
    %62 = tpu.matmul %61, %48, %cst_31 {dimension_numbers = #tpu.dot_dimension_numbers<[2], [1], [1], [2], [0, 0, 0, 1, 1, 2], [0], [0]>} : vector<2x8x8xf32>, vector<2x8x8xf32>, vector<2x8x8xf32> -> vector<2x8x8xf32>
    "tpu.trace_stop"() : () -> ()
    %63 = vector.shape_cast %62 : vector<2x8x8xf32> to vector<16x8xf32>
    %64 = vector.extract_strided_slice %23 {offsets = [8, 0], sizes = [8, 32], strides = [1, 1]} : vector<32x32xf32> to vector<8x32xf32>
    %cst_32 = arith.constant dense<0.000000e+00> : vector<16x32xf32>
    %65 = tpu.matmul %63, %64, %cst_32 {dimension_numbers = #tpu.dot_dimension_numbers<[1], [0], [0], [1], [0, 0, 1, 1], [], []>} : vector<16x8xf32>, vector<8x32xf32>, vector<16x32xf32> -> vector<16x32xf32>
    %66 = arith.addf %45, %65 : vector<16x32xf32>
    %67 = vector.extract_strided_slice %20 {offsets = [0, 0, 16], sizes = [2, 8, 8], strides = [1, 1, 1]} : vector<2x8x32xf32> to vector<2x8x8xf32>
    %68 = vector.extract_strided_slice %21 {offsets = [0, 0, 16], sizes = [2, 8, 8], strides = [1, 1, 1]} : vector<2x8x64xf32> to vector<2x8x8xf32>
    %69 = vector.extract_strided_slice %21 {offsets = [0, 0, 48], sizes = [2, 8, 8], strides = [1, 1, 1]} : vector<2x8x64xf32> to vector<2x8x8xf32>
    "tpu.trace_start"() <{level = 10 : i32, message = "bld,bsd->bls"}> : () -> ()
    %cst_33 = arith.constant dense<0.000000e+00> : vector<2x8x8xf32>
    %70 = tpu.matmul %67, %68, %cst_33 {dimension_numbers = #tpu.dot_dimension_numbers<[2], [2], [1], [1], [0, 0, 0, 1, 1, 1], [0], [0]>} : vector<2x8x8xf32>, vector<2x8x8xf32>, vector<2x8x8xf32> -> vector<2x8x8xf32>
    "tpu.trace_stop"() : () -> ()
    %71 = vector.broadcast %22 : vector<2x1x8xf32> to vector<2x8x8xf32>
    %72 = arith.addf %70, %71 : vector<2x8x8xf32>
    %cst_34 = arith.constant dense<0xFF800000> : vector<2x8xf32>
    %73 = vector.multi_reduction <maximumf>, %72, %cst_34 [2] : vector<2x8x8xf32> to vector<2x8xf32>
    %74 = vector.shape_cast %73 : vector<2x8xf32> to vector<2x8x1xf32>
    %75 = vector.broadcast %74 : vector<2x8x1xf32> to vector<2x8x8xf32>
    %76 = arith.subf %72, %75 : vector<2x8x8xf32>
    %77 = math.exp %76 : vector<2x8x8xf32>
    %cst_35 = arith.constant dense<0.000000e+00> : vector<2x8xf32>
    %78 = vector.multi_reduction <add>, %77, %cst_35 [2] : vector<2x8x8xf32> to vector<2x8xf32>
    %79 = vector.shape_cast %78 : vector<2x8xf32> to vector<2x8x1xf32>
    %80 = tpu.reciprocal %79 : vector<2x8x1xf32> -> vector<2x8x1xf32>
    %81 = vector.broadcast %80 : vector<2x8x1xf32> to vector<2x8x8xf32>
    %82 = arith.mulf %77, %81 : vector<2x8x8xf32>
    "tpu.trace_start"() <{level = 10 : i32, message = "bls,bsd->bld"}> : () -> ()
    %cst_36 = arith.constant dense<0.000000e+00> : vector<2x8x8xf32>
    %83 = tpu.matmul %82, %69, %cst_36 {dimension_numbers = #tpu.dot_dimension_numbers<[2], [1], [1], [2], [0, 0, 0, 1, 1, 2], [0], [0]>} : vector<2x8x8xf32>, vector<2x8x8xf32>, vector<2x8x8xf32> -> vector<2x8x8xf32>
    "tpu.trace_stop"() : () -> ()
    %84 = vector.shape_cast %83 : vector<2x8x8xf32> to vector<16x8xf32>
    %85 = vector.extract_strided_slice %23 {offsets = [16, 0], sizes = [8, 32], strides = [1, 1]} : vector<32x32xf32> to vector<8x32xf32>
    %cst_37 = arith.constant dense<0.000000e+00> : vector<16x32xf32>
    %86 = tpu.matmul %84, %85, %cst_37 {dimension_numbers = #tpu.dot_dimension_numbers<[1], [0], [0], [1], [0, 0, 1, 1], [], []>} : vector<16x8xf32>, vector<8x32xf32>, vector<16x32xf32> -> vector<16x32xf32>
    %87 = arith.addf %66, %86 : vector<16x32xf32>
    %88 = vector.extract_strided_slice %20 {offsets = [0, 0, 24], sizes = [2, 8, 8], strides = [1, 1, 1]} : vector<2x8x32xf32> to vector<2x8x8xf32>
    %89 = vector.extract_strided_slice %21 {offsets = [0, 0, 24], sizes = [2, 8, 8], strides = [1, 1, 1]} : vector<2x8x64xf32> to vector<2x8x8xf32>
    %90 = vector.extract_strided_slice %21 {offsets = [0, 0, 56], sizes = [2, 8, 8], strides = [1, 1, 1]} : vector<2x8x64xf32> to vector<2x8x8xf32>
    "tpu.trace_start"() <{level = 10 : i32, message = "bld,bsd->bls"}> : () -> ()
    %cst_38 = arith.constant dense<0.000000e+00> : vector<2x8x8xf32>
    %91 = tpu.matmul %88, %89, %cst_38 {dimension_numbers = #tpu.dot_dimension_numbers<[2], [2], [1], [1], [0, 0, 0, 1, 1, 1], [0], [0]>} : vector<2x8x8xf32>, vector<2x8x8xf32>, vector<2x8x8xf32> -> vector<2x8x8xf32>
    "tpu.trace_stop"() : () -> ()
    %92 = vector.broadcast %22 : vector<2x1x8xf32> to vector<2x8x8xf32>
    %93 = arith.addf %91, %92 : vector<2x8x8xf32>
    %cst_39 = arith.constant dense<0xFF800000> : vector<2x8xf32>
    %94 = vector.multi_reduction <maximumf>, %93, %cst_39 [2] : vector<2x8x8xf32> to vector<2x8xf32>
    %95 = vector.shape_cast %94 : vector<2x8xf32> to vector<2x8x1xf32>
    %96 = vector.broadcast %95 : vector<2x8x1xf32> to vector<2x8x8xf32>
    %97 = arith.subf %93, %96 : vector<2x8x8xf32>
    %98 = math.exp %97 : vector<2x8x8xf32>
    %cst_40 = arith.constant dense<0.000000e+00> : vector<2x8xf32>
    %99 = vector.multi_reduction <add>, %98, %cst_40 [2] : vector<2x8x8xf32> to vector<2x8xf32>
    %100 = vector.shape_cast %99 : vector<2x8xf32> to vector<2x8x1xf32>
    %101 = tpu.reciprocal %100 : vector<2x8x1xf32> -> vector<2x8x1xf32>
    %102 = vector.broadcast %101 : vector<2x8x1xf32> to vector<2x8x8xf32>
    %103 = arith.mulf %98, %102 : vector<2x8x8xf32>
    "tpu.trace_start"() <{level = 10 : i32, message = "bls,bsd->bld"}> : () -> ()
    %cst_41 = arith.constant dense<0.000000e+00> : vector<2x8x8xf32>
    %104 = tpu.matmul %103, %90, %cst_41 {dimension_numbers = #tpu.dot_dimension_numbers<[2], [1], [1], [2], [0, 0, 0, 1, 1, 2], [0], [0]>} : vector<2x8x8xf32>, vector<2x8x8xf32>, vector<2x8x8xf32> -> vector<2x8x8xf32>
    "tpu.trace_stop"() : () -> ()
    %105 = vector.shape_cast %104 : vector<2x8x8xf32> to vector<16x8xf32>
    %106 = vector.extract_strided_slice %23 {offsets = [24, 0], sizes = [8, 32], strides = [1, 1]} : vector<32x32xf32> to vector<8x32xf32>
    %cst_42 = arith.constant dense<0.000000e+00> : vector<16x32xf32>
    %107 = tpu.matmul %105, %106, %cst_42 {dimension_numbers = #tpu.dot_dimension_numbers<[1], [0], [0], [1], [0, 0, 1, 1], [], []>} : vector<16x8xf32>, vector<8x32xf32>, vector<16x32xf32> -> vector<16x32xf32>
    %108 = arith.addf %87, %107 : vector<16x32xf32>
    %c0_43 = arith.constant 0 : index
    %c0_44 = arith.constant 0 : index
    %109 = vector.load %arg10[%c0_43, %c0_44] : memref<1x32xf32, #tpu.memory_space<vmem>>, vector<1x32xf32>
    %110 = vector.shape_cast %109 : vector<1x32xf32> to vector<32xf32>
    %111 = vector.shape_cast %110 : vector<32xf32> to vector<1x32xf32>
    %112 = vector.broadcast %111 : vector<1x32xf32> to vector<16x32xf32>
    %113 = arith.addf %108, %112 : vector<16x32xf32>
    %114 = vector.shape_cast %113 : vector<16x32xf32> to vector<2x8x32xf32>
    %115 = arith.mulf %0, %114 : vector<2x8x32xf32>
    %c0_45 = arith.constant 0 : index
    %c0_46 = arith.constant 0 : index
    %c0_47 = arith.constant 0 : index
    %116 = vector.load %arg11[%c0_45, %c0_46, %c0_47] : memref<2x8x32xf32, #tpu.memory_space<vmem>>, vector<2x8x32xf32>
    tpu.vector_store %arg11[%c0_45, %c0_46, %c0_47], %115 {strides = array<i32>} : memref<2x8x32xf32, #tpu.memory_space<vmem>>, vector<2x8x32xf32>,
    return
  }
  func.func @transform_0(%arg0: i32) -> (i32, i32, i32) {
    %c0_i32 = arith.constant 0 : i32
    %c0_i32_0 = arith.constant 0 : i32
    %c0_i32_1 = arith.constant 0 : i32
    return %arg0, %c0_i32, %c0_i32_0 : i32, i32, i32
  }
  func.func @transform_1(%arg0: i32) -> (i32, i32, i32) {
    %c0_i32 = arith.constant 0 : i32
    %c0_i32_0 = arith.constant 0 : i32
    %c0_i32_1 = arith.constant 0 : i32
    return %arg0, %c0_i32, %c0_i32_0 : i32, i32, i32
  }
  func.func @transform_2(%arg0: i32) -> (i32, i32, i32) {
    %c0_i32 = arith.constant 0 : i32
    %c0_i32_0 = arith.constant 0 : i32
    %c0_i32_1 = arith.constant 0 : i32
    return %arg0, %c0_i32, %c0_i32_0 : i32, i32, i32
  }
  func.func @transform_3(%arg0: i32) -> (i32, i32, i32) {
    %c0_i32 = arith.constant 0 : i32
    %c0_i32_0 = arith.constant 0 : i32
    %c0_i32_1 = arith.constant 0 : i32
    return %arg0, %c0_i32, %c0_i32_0 : i32, i32, i32
  }
  func.func @transform_4(%arg0: i32) -> (i32, i32) {
    %c0_i32 = arith.constant 0 : i32
    %c0_i32_0 = arith.constant 0 : i32
    %c0_i32_1 = arith.constant 0 : i32
    return %c0_i32, %c0_i32_0 : i32, i32
  }
  func.func @transform_5(%arg0: i32) -> (i32, i32) {
    %c0_i32 = arith.constant 0 : i32
    %c0_i32_0 = arith.constant 0 : i32
    %c0_i32_1 = arith.constant 0 : i32
    return %c0_i32, %c0_i32_0 : i32, i32
  }
  func.func @transform_6(%arg0: i32) -> (i32, i32) {
    %c0_i32 = arith.constant 0 : i32
    %c0_i32_0 = arith.constant 0 : i32
    %c0_i32_1 = arith.constant 0 : i32
    return %c0_i32, %c0_i32_0 : i32, i32
  }
  func.func @transform_7(%arg0: i32) -> (i32, i32) {
    %c0_i32 = arith.constant 0 : i32
    %c0_i32_0 = arith.constant 0 : i32
    %c0_i32_1 = arith.constant 0 : i32
    return %c0_i32, %c0_i32_0 : i32, i32
  }
  func.func @transform_8(%arg0: i32) -> (i32, i32) {
    %c0_i32 = arith.constant 0 : i32
    %c0_i32_0 = arith.constant 0 : i32
    %c0_i32_1 = arith.constant 0 : i32
    return %c0_i32, %c0_i32_0 : i32, i32
  }
  func.func @transform_9(%arg0: i32) -> (i32, i32) {
    %c0_i32 = arith.constant 0 : i32
    %c0_i32_0 = arith.constant 0 : i32
    %c0_i32_1 = arith.constant 0 : i32
    return %c0_i32, %c0_i32_0 : i32, i32
  }
  func.func @transform_10(%arg0: i32) -> (i32, i32, i32) {
    %c0_i32 = arith.constant 0 : i32
    %c0_i32_0 = arith.constant 0 : i32
    %c0_i32_1 = arith.constant 0 : i32
    return %arg0, %c0_i32, %c0_i32_0 : i32, i32, i32
  }
}

</mosaic_0001>

<bundles_post_ra>
// kernel: tpu_custom_call.1
= control target key start
LH: loop header
LB: loop body
LE: loop exit
PB: predicated region body
PF: predicated region fallthrough
CT: control target
= control target key end

     0   :  { %15 = vsyncpa [#allocation3], 0  ;;  %s2842_s0 = inlined_call_operand.hbm [shape: f32[2,8,32], index: 0, kind: input, shape index: {}]   ;;  %s2843_s1 = inlined_call_operand.hbm [shape: f32[2,8,32], index: 1, kind: input, shape index: {}]   ;;  %s2844_s2 = inlined_call_operand.hbm [shape: f32[2,8,32], index: 2, kind: input, shape index: {}]   ;;  %s2845_s3 = inlined_call_operand.vmem [shape: f32[2,1,8], index: 3, kind: input, shape index: {}]   ;;  %s2846_s4 = inlined_call_operand.hbm [shape: f32[32,32], index: 4, kind: input, shape index: {}]   ;;  %s2847_s5 = inlined_call_operand.hbm [shape: f32[32,64], index: 5, kind: input, shape index: {}]   ;;  %s2848_s6 = inlined_call_operand.hbm [shape: f32[32,32], index: 6, kind: input, shape index: {}]   ;;  %s2849_s7 = inlined_call_operand.vmem [shape: f32[1,32], index: 7, kind: input, shape index: {}]   ;;  %s2850_s8 = inlined_call_operand.vmem [shape: f32[1,64], index: 8, kind: input, shape index: {}]   ;;  %s2851_s9 = inlined_call_operand.vmem [shape: f32[1,32], index: 9, kind: input, shape index: {}]   ;;  %s2852_s10 = inlined_call_operand.hbm [shape: f32[2,8,32], index: 10, kind: output, shape index: {}]  }
   0x1   :  { %16 = vsyncpa [#allocation6], 0 }
   0x2   :  { %17 = vsyncpa [#allocation9], 0 }
   0x3   :  { %18 = vsyncpa [#allocation12], 0 }
   0x4   :  { %19 = vsyncpa [#allocation4], 0  ;;  %s2462_s13 = smov [#allocation5]   ;;  %s2463_s15 = smov [#allocation8]  }
   0x5   :  { %s37_s14 = sshll.u32 %s2462_s13, 4  ;;  %s63_s16 = sshll.u32 %s2463_s15, 4  ;;  %s38_s14 = int_to_ptr.vmem [resolvable:$true] %s37_s14  ;;  %s2535_s16 = int_to_ptr.vmem [resolvable:$true] %s63_s16 }
   0x6   :  { %s2298_s19 = scalar_lea.hbm %s2843_s1, 256 }
   0x7   :  { %p2299_p0 = scmp.ne.s32.totalorder %s2843_s1, %s2298_s19  ;;  %p2302_p1 = scmp.lt.u32.totalorder %s2298_s19, %s2843_s1 }
   0x9   :  { %p2304_p2 = pnand %p2302_p1, %p2299_p0 }
   0xb   :  { %2307 = shalt.err (!%p2304_p2)
}
   0xc   :  { %s2308_s24 = scalar_lea.vmem %s38_s14, 256  ;;  %p2313_p4 = scmp.lt.s32.totalorder %s38_s14, %s38_s14 }
   0xd   :  { %p2309_p3 = scmp.ne.s32.totalorder %s38_s14, %s2308_s24  ;;  %p2314_p5 = scmp.lt.s32.totalorder %s2308_s24, %s2308_s24 }
   0xf   :  { %p2315_p6 = por %p2314_p5, %p2313_p4 }
  0x11   :  { %p2316_p7 = pnand %p2315_p6, %p2309_p3 }
  0x13   :  { %2319 = shalt.err (!%p2316_p7)
}
  0x14   :  { %s2464_s25 = smov 128   ;;  %s2465_s26 = smov 8  }
  0x15   :  { %43 = dma.hbm_to_vmem [thread:$0]  %s2843_s1, 256, %s38_s14, [#allocation6], %s2464_s25, %s2464_s25, %s2465_s26  }
  0x16   :  { %s2320_s11 = scalar_lea.hbm %s2846_s4, 512 }
  0x17   :  { %p2321_p8 = scmp.ne.s32.totalorder %s2846_s4, %s2320_s11  ;;  %p2324_p9 = scmp.lt.u32.totalorder %s2320_s11, %s2846_s4 }
  0x19   :  { %p2326_p10 = pnand %p2324_p9, %p2321_p8 }
  0x1b   :  { %2329 = shalt.err (!%p2326_p10)
}
  0x1c   :  { %s2330_s18 = scalar_lea.vmem %s2535_s16, 512  ;;  %p2335_p12 = scmp.lt.s32.totalorder %s2535_s16, %s2535_s16 }
  0x1d   :  { %p2331_p11 = scmp.ne.s32.totalorder %s2535_s16, %s2330_s18  ;;  %p2336_p13 = scmp.lt.s32.totalorder %s2330_s18, %s2330_s18 }
  0x1f   :  { %p2337_p0 = por %p2336_p13, %p2335_p12 }
  0x21   :  { %p2338_p1 = pnand %p2337_p0, %p2331_p11 }
  0x23   :  { %2341 = shalt.err (!%p2338_p1)
}
  0x24   :  { %69 = dma.hbm_to_vmem [thread:$0]  %s2846_s4, 512, %s2535_s16, [#allocation9], %s2464_s25, %s2464_s25, %s2465_s26  }
  0x25   :  { %s2466_s19 = smov [#allocation2]   ;;  %s2467_s21 = smov [#allocation7]  }
  0x26   :  { %s25_s20 = sshll.u32 %s2466_s19, 4  ;;  %s49_s22 = sshll.u32 %s2467_s21, 4  ;;  %s26_s20 = int_to_ptr.vmem [resolvable:$true] %s25_s20  ;;  %s2572_s22 = int_to_ptr.vmem [resolvable:$true] %s49_s22 }
  0x27   :  { %s2342_s27 = scalar_lea.hbm %s2842_s0, 256 }
  0x28   :  { %p2343_p2 = scmp.ne.s32.totalorder %s2842_s0, %s2342_s27  ;;  %p2346_p3 = scmp.lt.u32.totalorder %s2342_s27, %s2842_s0 }
  0x2a   :  { %p2348_p4 = pnand %p2346_p3, %p2343_p2 }
  0x2c   :  { %2351 = shalt.err (!%p2348_p4)
}
  0x2d   :  { %s2352_s4 = scalar_lea.vmem %s26_s20, 256  ;;  %p2357_p6 = scmp.lt.s32.totalorder %s26_s20, %s26_s20 }
  0x2e   :  { %p2353_p5 = scmp.ne.s32.totalorder %s26_s20, %s2352_s4  ;;  %p2358_p7 = scmp.lt.s32.totalorder %s2352_s4, %s2352_s4 }
  0x30   :  { %p2359_p8 = por %p2358_p7, %p2357_p6 }
  0x32   :  { %p2360_p9 = pnand %p2359_p8, %p2353_p5 }
  0x34   :  { %2363 = shalt.err (!%p2360_p9)
}
  0x35   :  { %31 = dma.hbm_to_vmem [thread:$0]  %s2842_s0, 256, %s26_s20, [#allocation3], %s2464_s25, %s2464_s25, %s2465_s26  }
  0x36   :  { %s2364_s17 = scalar_lea.hbm %s2844_s2, 256 }
  0x37   :  { %p2365_p10 = scmp.ne.s32.totalorder %s2844_s2, %s2364_s17  ;;  %p2368_p11 = scmp.lt.u32.totalorder %s2364_s17, %s2844_s2 }
  0x39   :  { %p2370_p12 = pnand %p2368_p11, %p2365_p10 }
  0x3b   :  { %2373 = shalt.err (!%p2370_p12)
}
  0x3c   :  { %s2374_s21 = scalar_lea.vmem %s2572_s22, 256  ;;  %p2379_p0 = scmp.lt.s32.totalorder %s2572_s22, %s2572_s22 }
  0x3d   :  { %p2375_p13 = scmp.ne.s32.totalorder %s2572_s22, %s2374_s21  ;;  %p2380_p1 = scmp.lt.s32.totalorder %s2374_s21, %s2374_s21 }
  0x3f   :  { %p2381_p2 = por %p2380_p1, %p2379_p0 }
  0x41   :  { %p2382_p3 = pnand %p2381_p2, %p2375_p13 }
  0x43   :  { %2385 = shalt.err (!%p2382_p3)
}
  0x44   :  { %55 = dma.hbm_to_vmem [thread:$0]  %s2844_s2, 256, %s2572_s22, [#allocation6], %s2464_s25, %s2464_s25, %s2465_s26  }
  0x45   :  { %s2468_s23 = smov [#allocation10]   ;;  %s2469_s27 = smov [#allocation11]  }
  0x46   :  { %s75_s24 = sshll.u32 %s2468_s23, 4  ;;  %s87_s28 = sshll.u32 %s2469_s27, 4  ;;  %s76_s24 = int_to_ptr.vmem [resolvable:$true] %s75_s24  ;;  %s2609_s28 = int_to_ptr.vmem [resolvable:$true] %s87_s28 }
  0x47   :  { %s2386_s11 = scalar_lea.hbm %s2847_s5, 512 }
  0x48   :  { %p2387_p4 = scmp.ne.s32.totalorder %s2847_s5, %s2386_s11  ;;  %p2390_p5 = scmp.lt.u32.totalorder %s2386_s11, %s2847_s5 }
  0x4a   :  { %p2392_p6 = pnand %p2390_p5, %p2387_p4 }
  0x4c   :  { %2395 = shalt.err (!%p2392_p6)
}
  0x4d   :  { %s2396_s2 = scalar_lea.vmem %s76_s24, 512  ;;  %p2401_p8 = scmp.lt.s32.totalorder %s76_s24, %s76_s24 }
  0x4e   :  { %p2397_p7 = scmp.ne.s32.totalorder %s76_s24, %s2396_s2  ;;  %p2402_p9 = scmp.lt.s32.totalorder %s2396_s2, %s2396_s2 }
  0x50   :  { %p2403_p10 = por %p2402_p9, %p2401_p8 }
  0x52   :  { %p2404_p11 = pnand %p2403_p10, %p2397_p7 }
  0x54   :  { %2407 = shalt.err (!%p2404_p11)
}
  0x55   :  { %81 = dma.hbm_to_vmem [thread:$0]  %s2847_s5, 512, %s76_s24, [#allocation9], %s2464_s25, %s2464_s25, %s2465_s26  }
  0x56   :  { %s2408_s1 = scalar_lea.hbm %s2848_s6, 512 }
  0x57   :  { %p2409_p12 = scmp.ne.s32.totalorder %s2848_s6, %s2408_s1  ;;  %p2412_p13 = scmp.lt.u32.totalorder %s2408_s1, %s2848_s6 }
  0x59   :  { %p2414_p0 = pnand %p2412_p13, %p2409_p12 }
  0x5b   :  { %2417 = shalt.err (!%p2414_p0)
}
  0x5c   :  { %s2418_s20 = scalar_lea.vmem %s2609_s28, 512  ;;  %p2423_p2 = scmp.lt.s32.totalorder %s2609_s28, %s2609_s28 }
  0x5d   :  { %p2419_p1 = scmp.ne.s32.totalorder %s2609_s28, %s2418_s20  ;;  %p2424_p3 = scmp.lt.s32.totalorder %s2418_s20, %s2418_s20 }
  0x5f   :  { %p2425_p4 = por %p2424_p3, %p2423_p2 }
  0x61   :  { %p2426_p5 = pnand %p2425_p4, %p2419_p1 }
  0x63   :  { %2429 = shalt.err (!%p2426_p5)
}
  0x64   :  { %93 = dma.hbm_to_vmem [thread:$0]  %s2848_s6, 512, %s2609_s28, [#allocation12], %s2464_s25, %s2464_s25, %s2465_s26  }
  0x65   :  { %2452 = dma.done.wait [#allocation3], 256  }
  0x66   :  { %2453 = vsyncadd [#allocation3], 4294967040 }
  0x67   :  { %2454 = dma.done.wait [#allocation6], 512  }
  0x68   :  { %2455 = vsyncadd [#allocation6], 4294966784 }
  0x69   :  { %2456 = dma.done.wait [#allocation9], 1024  }
  0x6a   :  { %2457 = vsyncadd [#allocation9], 4294966272 }
  0x6b   :  { %2458 = dma.done.wait [#allocation12], 512  }
  0x6c   :  { %2459 = vsyncadd [#allocation12], 4294966784  ;;  %v219_v0 = vld [vmem:[#allocation10] sm:$0xff]  ;;  %v220_v1 = vld [vmem:[#allocation10 + $0x8] sm:$0xff]  ;;  %vm137_vm0 = vcmask 261120   ;;  %v2470_v20 = vmov 0.0  }
  0x6d   :  { %v126_v2 = vld [vmem:[#allocation8] sm:$0xff]  ;;  %v2234_v3 = vpack.c.bf16 %v220_v1, %v219_v0  ;;  %v127_v4 = vld [vmem:[#allocation8 + $0x8] sm:$0xff]  ;;  %v221_v5 = vld [vmem:[#allocation10 + $0x10] sm:$0xff]  ;;  %vm2471_vm1 = vmmov 0   ;;  %vm329_vm2 = vcmask 64512   ;;  %s2472_s29 = smov 96  }
  0x6e   :  { %v222_v6 = vld [vmem:[#allocation10 + $0x18] sm:$0xff]  ;;  %v2226_v7 = vpack.c.bf16 %v127_v4, %v126_v2  ;;  %v128_v9 = vld [vmem:[#allocation8 + $0x10] sm:$0xff]  ;;  %v122_v14 = vld [vmem:[#allocation5] sm:$0xff]  ;;  %s2475_s16 = smov 112   ;;  %s2476_s12 = smov 80  }
  0x6f   :  { %v2238_v8 = vpack.c.bf16 %v222_v6, %v221_v5  ;;  %v129_v10 = vld [vmem:[#allocation8 + $0x18] sm:$0xff]  ;;  %v120_v11 = vld [vmem:[#allocation7] sm:$0xff]  ;;  %2235 = vmatprep.subr.bf16.mxu1 %v2234_v3  ;;  %v123_v17 = vld [vmem:[#allocation5 + $0x8] sm:$0xff]  ;;  %s2477_s13 = smov 104   ;;  %s2478_s2 = smov 72  }
  0x70   :  { %v2230_v12 = vpack.c.bf16 %v129_v10, %v128_v9  ;;  %2123 = vmatprep.mubr.msk.f32.mxu1 %vm137_vm0, %v120_v11  ;;  %v2647_v13 = vld [vmem:[#allocation2] sm:$0xff]  ;;  %2237 = vmatpush3.bf16.msra.mxu1 %v2234_v3  ;;  %v2650_v16 = vld [vmem:[#allocation2 + $0x8] sm:$0xff]  ;;  %s2479_s17 = smov [#allocation13]  }
  0x71   :  { %2227 = vmatprep.subr.bf16.mxu0 %v2226_v7  ;;  %v124_v15 = vadd.f32 %v122_v14, %v2647_v13  ;;  %2239 = vmatprep.subr.bf16.mxu1 %v2238_v8  ;;  %v121_v18 = vld [vmem:[#allocation7 + $0x8] sm:$0xff]  ;;  %v125_v19 = vadd.f32 %v123_v17, %v2650_v16  ;;  %v2010_v21 = vld [vmem:[%s2850_s8] ss:$0 sm:$0xff]  ;;  %s2473_s8 = smov 120   ;;  %v2703_v36 = vld [vmem:[%s2845_s3 + $0x1] ss:$0 sm:$0xff] }
  0x72   :  { %2229 = vmatpush3.bf16.msra.mxu0 %v2226_v7  ;;  %v2007_v23 = vld [vmem:[%s2849_s7] ss:$0 sm:$0xff]  ;;  %s1992_s18 = sshll.u32 %s2479_s17, 4  ;;  %s1993_s18 = int_to_ptr.vmem [resolvable:$true] %s1992_s18 }
  0x73   :  { %2231 = vmatprep.subr.bf16.mxu0 %v2230_v12  ;;  %2112 = vmatprep.mubr.msk.f32.mxu0 %vm137_vm0, %v124_v15  ;;  %v2697_v32 = vld [vmem:[%s2845_s3] ss:$0 sm:$0xff]  ;;  %s2474_s3 = smov 88   ;;  %s2430_s1 = scalar_lea.vmem %s1993_s18, 256 }
  0x74   :  { %2241 = vmatpush3.bf16.msra.mxu1 %v2238_v8  ;;  %p2431_p6 = scmp.ne.s32.totalorder %s1993_s18, %s2430_s1  ;;  %p2435_p7 = scmp.lt.s32.totalorder %s1993_s18, %s1993_s18 }
  0x75   :  { %2126 = vmatprep.subr.mxu1 %v2470_v20  ;;  %p2436_p8 = scmp.lt.s32.totalorder %s2430_s1, %s2430_s1 }
  0x76   :  { %2233 = vmatpush3.bf16.msra.mxu0 %v2230_v12 }
  0x77   :  { %2124 = vmatmul.mubr.msk.f32.vlgmr.msra.gmra.mrb[0].mxu1 %vm137_vm0, %v121_v18  ;;  %2136 = vmatprep.subr.mxu0 %v2470_v20  ;;  %p2437_p9 = por %p2436_p8, %p2435_p7 }
  0x78   :  { %2128 = vmatprep.mubr.msk.f32.mxu1 %vm2471_vm1, %v2470_v20 }
  0x79   :  { %2113 = vmatmul.mubr.msk.f32.vlgmr.msra.gmra.mrb[0].mxu0 %vm137_vm0, %v125_v19  ;;  %p2438_p10 = pnand %p2437_p9, %p2431_p6 }
  0x7a   :  { %2138 = vmatprep.mubr.msk.f32.mxu0 %vm2471_vm1, %v2470_v20 }
 0x14a   :  { %v2125_v22 = vpop.f32.mrb[0].mxu1 }
 0x14b   :  { %v2668_v24 = vadd.f32 %v2125_v22, %v2010_v21  ;;  %v302_v25 = vpop.f32.mrb[1].mxu1 }
 0x14c   :  { %v2114_v26 = vpop.f32.mrb[0].mxu0  ;;  %v2670_v27 = vadd.f32 %v2010_v21, %v302_v25 }
 0x14d   :  { %v210_v28 = vpop.f32.mrb[1].mxu0  ;;  %580 = vrot.lane.b32.xlu1 %v2668_v24, %s2472_s29  ;;  %v2686_v30 = vadd.f32 %v2114_v26, %v2007_v23 }
 0x14e   :  { %v2673_v29 = vadd.f32 %v2007_v23, %v210_v28  ;;  %2127 = vmatpush3.xpose.msk.msra.mxu1 %vm329_vm2, %v2670_v27 }
 0x14f   :  { %2131 = vmatprep.subr.mxu1 %v2470_v20 }
 0x151   :  { %736 = vrot.lane.b32.xlu1 %v2668_v24, %s2473_s8  ;;  %2129 = vmatmul.mubr.msk.f32.vlgmr.msra.gmra.mrb[2].mxu1 %vm329_vm2, %v2673_v29 }
 0x152   :  { %2132 = vmatpush3.xpose.msk.msra.mxu1 %vm329_vm2, %v2668_v24  ;;  %2133 = vmatprep.mubr.msk.f32.mxu1 %vm2471_vm1, %v2470_v20 }
 0x153   :  { %2141 = vmatprep.subr.mxu1 %v2470_v20 }
 0x155   :  { %2134 = vmatmul.mubr.msk.f32.vlgmr.msra.gmra.mrb[4].mxu1 %vm329_vm2, %v2686_v30 }
 0x156   :  { %2143 = vmatprep.mubr.msk.f32.mxu1 %vm2471_vm1, %v2470_v20 }
 0x1bf   :  { %v581_v31 = vpop.permute.xlu1 %580 }
 0x1c0   :  { %2142 = vmatpush3.msra.mxu1 %v581_v31 }
 0x1c1   :  { %2151 = vmatprep.subr.mxu1 %v2470_v20 }
 0x1c3   :  { %v737_v42 = vpop.permute.xlu1 %736 }
 0x224   :  { %v402_v33 = vpop.f32.mrb[2].mxu1 }
 0x225   :  { %v403_v34 = vadd.f32 %v2697_v32, %v402_v33  ;;  %v2130_v35 = vpop.f32.mrb[3].mxu1 }
 0x227   :  { %v482_v37 = vsel %vm329_vm2, %v403_v34, -inf }
 0x228   :  { %483 = vmax.xlane.f32.xlu1 %v482_v37  ;;  %v478_v38 = vpop.f32.mrb[4].mxu1 }
 0x229   :  { %v479_v39 = vadd.f32 %v2703_v36, %v478_v38  ;;  %v2135_v40 = vpop.f32.mrb[5].mxu1 }
 0x22b   :  { %v485_v41 = vsel %vm329_vm2, %v479_v39, -inf }
 0x22c   :  { %486 = vmax.xlane.f32.xlu0 %v485_v41  ;;  %v314_v41 = vld [vmem:[#allocation11 + $0x8] sm:$0xff] }
 0x239   :  { %504 = vrot.lane.b32.xlu1 %v2670_v27, %s2472_s29 }
 0x23d   :  { %656 = vrot.lane.b32.xlu1 %v2673_v29, %s2473_s8 }
 0x2b5   :  { %v484_v43 = vpop.xlane.xlu1 %483 }
 0x2b6   :  { %v488_v50 = vsub.f32 %v403_v34, %v484_v43 }
 0x2b8   :  { %v490_v51 = vmul.f32 1.442695, %v488_v50 }
 0x2b9   :  { %v505_v44 = vpop.permute.xlu1 %504  ;;  %v487_v45 = vpop.xlane.xlu0 %486 }
 0x2ba   :  { %v489_v46 = vsub.f32 %v479_v39, %v487_v45  ;;  %2137 = vmatpush3.msra.mxu0 %v505_v44 }
 0x2bb   :  { %2146 = vmatprep.subr.mxu0 %v2470_v20 }
 0x2bc   :  { %v492_v47 = vmul.f32 1.442695, %v489_v46 }
 0x2bd   :  { %v657_v62 = vpop.permute.xlu1 %656 }
 0x2be   :  { %2266 = vpow2.f32 %v492_v47 }
 0x2bf   :  { %2268 = vpow2.f32 %v490_v51 }
 0x2c8   :  { %v2267_v48 = vpop.eup %2266 }
 0x2c9   :  { %v497_v49 = vsel %vm329_vm2, %v2267_v48, 0.0  ;;  %v2269_v52 = vpop.eup %2268 }
 0x2ca   :  { %498 = vadd.xlane.f32.xlu0 %v497_v49  ;;  %v494_v53 = vsel %vm329_vm2, %v2269_v52, 0.0 }
 0x2e0   :  { %734 = vrot.lane.b32.xlu0 %v2686_v30, %s2473_s8 }
 0x2ff   :  { %495 = vadd.xlane.f32.xlu0 %v494_v53 }
 0x315   :  { %658 = vrot.lane.b32.xlu0 %v2670_v27, %s2473_s8 }
 0x357   :  { %v499_v54 = vpop.xlane.xlu0 %498 }
 0x358   :  { %2270 = vrcp.f32 %v499_v54 }
 0x35b   :  { %v735_v57 = vpop.permute.xlu0 %734 }
 0x362   :  { %v2271_v55 = vpop.eup %2270 }
 0x363   :  { %v503_v56 = vmul.f32 %v2271_v55, %v2267_v48 }
 0x365   :  { %2144 = vmatmul.mubr.msk.f32.vlgmr.msra.gmra.mrb[6].mxu1 %vm329_vm2, %v503_v56 }
 0x366   :  { %2152 = vmatpush3.xpose.msk.msra.mxu1 %vm329_vm2, %v737_v42  ;;  %2153 = vmatprep.mubr.msk.f32.mxu1 %vm2471_vm1, %v2470_v20  ;;  %v313_v42 = vld [vmem:[#allocation11] sm:$0xff] }
 0x367   :  { %2161 = vmatprep.subr.mxu1 %v2470_v20 }
 0x369   :  { %2154 = vmatmul.mubr.msk.f32.vlgmr.msra.gmra.mrb[8].mxu1 %vm329_vm2, %v735_v57 }
 0x36a   :  { %2163 = vmatprep.mubr.msk.f32.mxu1 %vm2471_vm1, %v2470_v20 }
 0x38c   :  { %v496_v58 = vpop.xlane.xlu0 %495 }
 0x38d   :  { %2272 = vrcp.f32 %v496_v58 }
 0x390   :  { %v659_v61 = vpop.permute.xlu0 %658 }
 0x397   :  { %v2273_v59 = vpop.eup %2272 }
 0x398   :  { %v502_v60 = vmul.f32 %v2273_v59, %v2269_v52 }
 0x39a   :  { %2139 = vmatmul.mubr.msk.f32.vlgmr.msra.gmra.mrb[2].mxu0 %vm329_vm2, %v502_v60 }
 0x39b   :  { %2147 = vmatpush3.xpose.msk.msra.mxu0 %vm329_vm2, %v659_v61  ;;  %2148 = vmatprep.mubr.msk.f32.mxu0 %vm2471_vm1, %v2470_v20 }
 0x39c   :  { %2156 = vmatprep.subr.mxu0 %v2470_v20 }
 0x39e   :  { %2149 = vmatmul.mubr.msk.f32.vlgmr.msra.gmra.mrb[4].mxu0 %vm329_vm2, %v657_v62 }
 0x39f   :  { %2158 = vmatprep.mubr.msk.f32.mxu0 %vm2471_vm1, %v2470_v20 }
 0x438   :  { %v2734_v63 = vpop.f32.mrb[6].mxu1 }
 0x439   :  { %v2145_v0 = vpop.f32.mrb[7].mxu1 }
 0x43c   :  { %v808_v1 = vpop.f32.mrb[8].mxu1 }
 0x43d   :  { %v809_v2 = vadd.f32 %v2703_v36, %v808_v1  ;;  %v2155_v3 = vpop.f32.mrb[9].mxu1 }
 0x43e   :  { %v315_v3 = vld [vmem:[#allocation11 + $0x10] sm:$0xff] }
 0x43f   :  { %v815_v4 = vsel %vm329_vm2, %v809_v2, -inf }
 0x440   :  { %816 = vmax.xlane.f32.xlu1 %v815_v4 }
 0x451   :  { %910 = vrot.lane.b32.xlu1 %v2668_v24, %s2474_s3 }
 0x455   :  { %1148 = vrot.lane.b32.xlu1 %v2673_v29, %s2475_s16 }
 0x459   :  { %1228 = vrot.lane.b32.xlu1 %v2668_v24, %s2475_s16 }
 0x45d   :  { %1226 = vrot.lane.b32.xlu1 %v2686_v30, %s2475_s16 }
 0x46d   :  { %v2742_v5 = vpop.f32.mrb[2].mxu0 }
 0x46e   :  { %v2140_v6 = vpop.f32.mrb[3].mxu0 }
 0x471   :  { %v730_v7 = vpop.f32.mrb[4].mxu0 }
 0x472   :  { %v2150_v8 = vpop.f32.mrb[5].mxu0  ;;  %v731_v9 = vadd.f32 %v2697_v32, %v730_v7 }
 0x474   :  { %v812_v10 = vsel %vm329_vm2, %v731_v9, -inf }
 0x481   :  { %813 = vmax.xlane.f32.xlu1 %v812_v10 }
 0x492   :  { %834 = vrot.lane.b32.xlu1 %v2670_v27, %s2474_s3 }
 0x496   :  { %1402 = vrot.lane.b32.xlu1 %v2668_v24, %s2476_s12 }
 0x49a   :  { %1563 = vrot.lane.b32.xlu1 %v2670_v27, %s2477_s13 }
 0x49e   :  { %1641 = vrot.lane.b32.xlu1 %v2668_v24, %s2477_s13 }
 0x4a2   :  { %1561 = vrot.lane.b32.xlu1 %v2673_v29, %s2477_s13 }
 0x4a6   :  { %1639 = vrot.lane.b32.xlu1 %v2686_v30, %s2477_s13 }
 0x4cd   :  { %v817_v11 = vpop.xlane.xlu1 %816 }
 0x4ce   :  { %v819_v12 = vsub.f32 %v809_v2, %v817_v11 }
 0x4d0   :  { %v822_v14 = vmul.f32 1.442695, %v819_v12 }
 0x4d1   :  { %v911_v15 = vpop.permute.xlu1 %910 }
 0x4d2   :  { %2274 = vpow2.f32 %v822_v14  ;;  %2162 = vmatpush3.msra.mxu1 %v911_v15 }
 0x4d3   :  { %2176 = vmatprep.subr.mxu1 %v2470_v20 }
 0x4d5   :  { %v1149_v19 = vpop.permute.xlu1 %1148 }
 0x4d9   :  { %v1229_v21 = vpop.permute.xlu1 %1228 }
 0x4dc   :  { %v2275_v17 = vpop.eup %2274 }
 0x4dd   :  { %v827_v18 = vsel %vm329_vm2, %v2275_v17, 0.0  ;;  %v1227_v22 = vpop.permute.xlu1 %1226 }
 0x4de   :  { %828 = vadd.xlane.f32.xlu0 %v827_v18 }
 0x4f4   :  { %1150 = vrot.lane.b32.xlu0 %v2670_v27, %s2475_s16 }
 0x50e   :  { %v814_v23 = vpop.xlane.xlu1 %813 }
 0x50f   :  { %v818_v25 = vsub.f32 %v731_v9, %v814_v23 }
 0x511   :  { %v820_v26 = vmul.f32 1.442695, %v818_v25 }
 0x512   :  { %v835_v28 = vpop.permute.xlu1 %834 }
 0x513   :  { %2276 = vpow2.f32 %v820_v26  ;;  %2157 = vmatpush3.msra.mxu0 %v835_v28 }
 0x514   :  { %2166 = vmatprep.subr.mxu0 %v314_v41 }
 0x516   :  { %v1403_v37 = vpop.permute.xlu1 %1402 }
 0x51d   :  { %v2277_v29 = vpop.eup %2276 }
 0x51e   :  { %v824_v30 = vsel %vm329_vm2, %v2277_v29, 0.0 }
 0x51f   :  { %825 = vadd.xlane.f32.xlu0 %v824_v30 }
 0x56b   :  { %v829_v31 = vpop.xlane.xlu0 %828 }
 0x56c   :  { %2278 = vrcp.f32 %v829_v31 }
 0x56f   :  { %v1151_v35 = vpop.permute.xlu0 %1150 }
 0x576   :  { %v2279_v33 = vpop.eup %2278 }
 0x577   :  { %v833_v34 = vmul.f32 %v2279_v33, %v2275_v17 }
 0x579   :  { %2164 = vmatmul.mubr.msk.f32.vlgmr.msra.gmra.mrb[10].mxu1 %vm329_vm2, %v833_v34 }
 0x57a   :  { %2177 = vmatpush3.xpose.msk.msra.mxu1 %vm329_vm2, %v1151_v35  ;;  %2178 = vmatprep.mubr.msk.f32.mxu1 %vm2471_vm1, %v2470_v20 }
 0x57b   :  { %2181 = vmatprep.subr.mxu1 %v2470_v20 }
 0x57d   :  { %2179 = vmatmul.mubr.msk.f32.vlgmr.msra.gmra.mrb[12].mxu1 %vm329_vm2, %v1149_v19 }
 0x57e   :  { %2182 = vmatpush3.xpose.msk.msra.mxu1 %vm329_vm2, %v1229_v21  ;;  %2183 = vmatprep.mubr.msk.f32.mxu1 %vm2471_vm1, %v2470_v20 }
 0x57f   :  { %2191 = vmatprep.subr.mxu1 %v2470_v20 }
 0x581   :  { %2184 = vmatmul.mubr.msk.f32.vlgmr.msra.gmra.mrb[14].mxu1 %vm329_vm2, %v1227_v22 }
 0x582   :  { %2192 = vmatpush3.msra.mxu1 %v1403_v37  ;;  %2193 = vmatprep.mubr.msk.f32.mxu1 %vm2471_vm1, %v2470_v20 }
 0x583   :  { %2201 = vmatprep.subr.mxu1 %v2470_v20 }
 0x5ac   :  { %v826_v38 = vpop.xlane.xlu0 %825 }
 0x5ad   :  { %2280 = vrcp.f32 %v826_v38 }
 0x5b7   :  { %v2281_v39 = vpop.eup %2280 }
 0x5b8   :  { %v832_v40 = vmul.f32 %v2281_v39, %v2277_v29 }
 0x5ba   :  { %2159 = vmatmul.mubr.msk.f32.vlgmr.msra.gmra.mrb[6].mxu0 %vm329_vm2, %v832_v40 }
 0x5bb   :  { %2167 = vmatpush3.msra.mxu0 %v314_v41 }
 0x5bc   :  { %2171 = vmatprep.subr.mxu0 %v313_v42 }
 0x64c   :  { %v982_v43 = vpop.f32.mrb[10].mxu1 }
 0x64d   :  { %v2165_v44 = vpop.f32.mrb[11].mxu1 }
 0x650   :  { %v1222_v45 = vpop.f32.mrb[12].mxu1 }
 0x651   :  { %v1223_v46 = vadd.f32 %v2697_v32, %v1222_v45  ;;  %v2180_v47 = vpop.f32.mrb[13].mxu1 }
 0x653   :  { %v1304_v48 = vsel %vm329_vm2, %v1223_v46, -inf }
 0x654   :  { %1305 = vmax.xlane.f32.xlu0 %v1304_v48  ;;  %v1300_v49 = vpop.f32.mrb[14].mxu1 }
 0x655   :  { %v1301_v50 = vadd.f32 %v2703_v36, %v1300_v49  ;;  %v2185_v51 = vpop.f32.mrb[15].mxu1 }
 0x657   :  { %v1307_v52 = vsel %vm329_vm2, %v1301_v50, -inf }
 0x658   :  { %1308 = vmax.xlane.f32.xlu0 %v1307_v52 }
 0x68d   :  { %v906_v53 = vpop.f32.mrb[6].mxu0 }
 0x68e   :  { %v2160_v54 = vpop.f32.mrb[7].mxu0  ;;  %2168 = vmatprep.mubr.msk.f32.mxu0 %vm329_vm2, %v906_v53 }
 0x68f   :  { %2169 = vmatmul.mubr.msk.f32.vlgmr.msra.gmra.mrb[8].mxu0 %vm329_vm2, %v982_v43 }
 0x690   :  { %2173 = vmatprep.mubr.msk.f32.mxu0 %vm329_vm2, %v2742_v5  ;;  %2172 = vmatpush3.msra.mxu0 %v313_v42  ;;  %v1564_v5 = vpop.permute.xlu1 %1563 }
 0x691   :  { %2186 = vmatprep.subr.mxu0 %v2470_v20 }
 0x694   :  { %v1642_v9 = vpop.permute.xlu1 %1641 }
 0x697   :  { %2174 = vmatmul.mubr.msk.f32.vlgmr.msra.gmra.mrb[8].mxu0 %vm329_vm2, %v2734_v63 }
 0x698   :  { %2188 = vmatprep.mubr.msk.f32.mxu0 %vm2471_vm1, %v2470_v20  ;;  %v1562_v11 = vpop.permute.xlu1 %1561 }
 0x69c   :  { %v1640_v18 = vpop.permute.xlu1 %1639 }
 0x6e1   :  { %v1306_v55 = vpop.xlane.xlu0 %1305 }
 0x6e2   :  { %v1310_v56 = vsub.f32 %v1223_v46, %v1306_v55 }
 0x6e4   :  { %v1312_v57 = vmul.f32 1.442695, %v1310_v56 }
 0x6e5   :  { %v1309_v58 = vpop.xlane.xlu0 %1308 }
 0x6e6   :  { %2282 = vpow2.f32 %v1312_v57  ;;  %v1311_v59 = vsub.f32 %v1301_v50, %v1309_v58 }
 0x6e8   :  { %v1314_v60 = vmul.f32 1.442695, %v1311_v59 }
 0x6ea   :  { %2284 = vpow2.f32 %v1314_v60 }
 0x6f0   :  { %v2283_v61 = vpop.eup %2282 }
 0x6f1   :  { %v1316_v62 = vsel %vm329_vm2, %v2283_v61, 0.0 }
 0x6f2   :  { %1317 = vadd.xlane.f32.xlu0 %v1316_v62 }
 0x6f4   :  { %v2285_v0 = vpop.eup %2284 }
 0x6f5   :  { %v1319_v1 = vsel %vm329_vm2, %v2285_v0, 0.0 }
 0x6f6   :  { %1320 = vadd.xlane.f32.xlu0 %v1319_v1 }
 0x70c   :  { %1326 = vrot.lane.b32.xlu0 %v2670_v27, %s2476_s12 }
 0x77f   :  { %v1318_v63 = vpop.xlane.xlu0 %1317 }
 0x780   :  { %2286 = vrcp.f32 %v1318_v63 }
 0x783   :  { %v1321_v2 = vpop.xlane.xlu0 %1320 }
 0x784   :  { %2288 = vrcp.f32 %v1321_v2 }
 0x787   :  { %v1327_v4 = vpop.permute.xlu0 %1326 }
 0x788   :  { %2187 = vmatpush3.msra.mxu0 %v1327_v4 }
 0x789   :  { %2196 = vmatprep.subr.mxu0 %v315_v3 }
 0x78a   :  { %v2287_v6 = vpop.eup %2286 }
 0x78b   :  { %v1324_v7 = vmul.f32 %v2287_v6, %v2283_v61 }
 0x78d   :  { %2189 = vmatmul.mubr.msk.f32.vlgmr.msra.gmra.mrb[10].mxu0 %vm329_vm2, %v1324_v7 }
 0x78e   :  { %v2289_v8 = vpop.eup %2288  ;;  %2197 = vmatpush3.msra.mxu0 %v315_v3 }
 0x78f   :  { %v1325_v10 = vmul.f32 %v2289_v8, %v2285_v0  ;;  %2206 = vmatprep.subr.mxu0 %v2470_v20 }
 0x791   :  { %2194 = vmatmul.mubr.msk.f32.vlgmr.msra.gmra.mrb[16].mxu1 %vm329_vm2, %v1325_v10 }
 0x792   :  { %2202 = vmatpush3.xpose.msk.msra.mxu1 %vm329_vm2, %v1564_v5  ;;  %2203 = vmatprep.mubr.msk.f32.mxu1 %vm2471_vm1, %v2470_v20 }
 0x793   :  { %2211 = vmatprep.subr.mxu1 %v2470_v20 }
 0x795   :  { %2204 = vmatmul.mubr.msk.f32.vlgmr.msra.gmra.mrb[18].mxu1 %vm329_vm2, %v1562_v11 }
 0x796   :  { %2213 = vmatprep.mubr.msk.f32.mxu1 %vm2471_vm1, %v2470_v20 }
 0x860   :  { %v1398_v12 = vpop.f32.mrb[10].mxu0 }
 0x861   :  { %v2190_v14 = vpop.f32.mrb[11].mxu0  ;;  %2198 = vmatprep.mubr.msk.f32.mxu0 %vm329_vm2, %v1398_v12 }
 0x864   :  { %v1474_v15 = vpop.f32.mrb[16].mxu1 }
 0x865   :  { %v2195_v17 = vpop.f32.mrb[17].mxu1  ;;  %2199 = vmatmul.mubr.msk.f32.vlgmr.msra.gmra.mrb[8].mxu0 %vm329_vm2, %v1474_v15 }
 0x866   :  { %2207 = vmatpush3.xpose.msk.msra.mxu0 %vm329_vm2, %v1642_v9  ;;  %2208 = vmatprep.mubr.msk.f32.mxu0 %vm2471_vm1, %v2470_v20 }
 0x867   :  { %2216 = vmatprep.subr.mxu0 %v2470_v20 }
 0x868   :  { %v1635_v19 = vpop.f32.mrb[18].mxu1 }
 0x869   :  { %v1636_v21 = vadd.f32 %v2697_v32, %v1635_v19  ;;  %v2205_v22 = vpop.f32.mrb[19].mxu1  ;;  %2209 = vmatmul.mubr.msk.f32.vlgmr.msra.gmra.mrb[12].mxu0 %vm329_vm2, %v1640_v18 }
 0x86a   :  { %2218 = vmatprep.mubr.msk.f32.mxu0 %vm2471_vm1, %v2470_v20 }
 0x86b   :  { %v1717_v23 = vsel %vm329_vm2, %v1636_v21, -inf }
 0x86c   :  { %1718 = vmax.xlane.f32.xlu1 %v1717_v23 }
 0x8f9   :  { %v1719_v25 = vpop.xlane.xlu1 %1718 }
 0x8fa   :  { %v1723_v26 = vsub.f32 %v1636_v21, %v1719_v25 }
 0x8fc   :  { %v1725_v28 = vmul.f32 1.442695, %v1723_v26 }
 0x8fe   :  { %2290 = vpow2.f32 %v1725_v28 }
 0x908   :  { %v2291_v32 = vpop.eup %2290 }
 0x909   :  { %v1729_v34 = vsel %vm329_vm2, %v2291_v32, 0.0 }
 0x93c   :  { %v1713_v29 = vpop.f32.mrb[12].mxu0 }
 0x93d   :  { %v1714_v30 = vadd.f32 %v2703_v36, %v1713_v29  ;;  %v2210_v31 = vpop.f32.mrb[13].mxu0 }
 0x93f   :  { %v1720_v33 = vsel %vm329_vm2, %v1714_v30, -inf }
 0x940   :  { %1721 = vmax.xlane.f32.xlu0 %v1720_v33 }
 0x944   :  { %1730 = vadd.xlane.f32.xlu0 %v1729_v34 }
 0x95a   :  { %1739 = vrot.lane.b32.xlu0 %v2670_v27, %s2478_s2  ;;  %v316_v27 = vld [vmem:[#allocation11 + $0x18] sm:$0xff] }
 0x9cd   :  { %v1722_v20 = vpop.xlane.xlu0 %1721 }
 0x9ce   :  { %v1724_v35 = vsub.f32 %v1714_v30, %v1722_v20 }
 0x9d0   :  { %v1727_v37 = vmul.f32 1.442695, %v1724_v35 }
 0x9d1   :  { %v1731_v38 = vpop.xlane.xlu0 %1730 }
 0x9d2   :  { %2292 = vpow2.f32 %v1727_v37 }
 0x9d3   :  { %2294 = vrcp.f32 %v1731_v38 }
 0x9d5   :  { %v1740_v39 = vpop.permute.xlu0 %1739 }
 0x9d6   :  { %2212 = vmatpush3.msra.mxu1 %v1740_v39 }
 0x9dc   :  { %v2293_v36 = vpop.eup %2292 }
 0x9dd   :  { %v2295_v40 = vpop.eup %2294  ;;  %v1732_v41 = vsel %vm329_vm2, %v2293_v36, 0.0 }
 0x9de   :  { %v1737_v42 = vmul.f32 %v2295_v40, %v2291_v32  ;;  %1733 = vadd.xlane.f32.xlu1 %v1732_v41 }
 0x9e0   :  { %2214 = vmatmul.mubr.msk.f32.vlgmr.msra.gmra.mrb[20].mxu1 %vm329_vm2, %v1737_v42 }
 0x9ef   :  { %1815 = vrot.lane.b32.xlu1 %v2668_v24, %s2478_s2  ;;  %v2047_v24 = vld [vmem:[%s2851_s9] ss:$0 sm:$0xff] }
 0xa6b   :  { %v1734_v43 = vpop.xlane.xlu1 %1733 }
 0xa6c   :  { %2296 = vrcp.f32 %v1734_v43 }
 0xa6f   :  { %v1816_v44 = vpop.permute.xlu1 %1815 }
 0xa70   :  { %2217 = vmatpush3.msra.mxu0 %v1816_v44 }
 0xa71   :  { %2221 = vmatprep.subr.mxu0 %v316_v27 }
 0xa76   :  { %v2297_v45 = vpop.eup %2296 }
 0xa77   :  { %v1738_v46 = vmul.f32 %v2297_v45, %v2293_v36 }
 0xa79   :  { %2219 = vmatmul.mubr.msk.f32.vlgmr.msra.gmra.mrb[14].mxu0 %vm329_vm2, %v1738_v46 }
 0xa7a   :  { %2222 = vmatpush3.msra.mxu0 %v316_v27 }
 0xab3   :  { %v1811_v47 = vpop.f32.mrb[20].mxu1 }
 0xab4   :  { %v2215_v48 = vpop.f32.mrb[21].mxu1  ;;  %2223 = vmatprep.mubr.msk.f32.mxu0 %vm329_vm2, %v1811_v47 }
 0xb4c   :  { %v1887_v49 = vpop.f32.mrb[14].mxu0 }
 0xb4d   :  { %v2220_v50 = vpop.f32.mrb[15].mxu0  ;;  %2224 = vmatmul.mubr.msk.f32.vlgmr.msra.gmra.mrb[8].mxu0 %vm329_vm2, %v1887_v49 }
 0xc20   :  { %v2225_v51 = vpop.f32.mrb[8].mxu0 }
 0xc21   :  { %v1982_v52 = vadd.f32 %v2225_v51, %v2047_v24  ;;  %v1963_v53 = vpop.f32.mrb[9].mxu0 }
 0xc22   :  { %v1981_v54 = vadd.f32 %v2047_v24, %v1963_v53 }
 0xc23   :  { %v1984_v55 = vmul.f32 %v1982_v52, %v2650_v16 }
 0xc24   :  { %v1983_v56 = vmul.f32 %v1981_v54, %v2647_v13 }
 0xc25   :  { %1986 = vst.msk [vmem:[#allocation13 + $0x8] sm:$0xff] %vm137_vm0, %v1984_v55 }
 0xc26   :  { %1985 = vst.msk [vmem:[#allocation13] sm:$0xff] %vm137_vm0, %v1983_v56 }
 0xc27   :  { %2441 = shalt.err (!%p2438_p10)
}
 0xc28   :  { %s2442_s19 = scalar_lea.hbm %s2852_s10, 256 }
 0xc29   :  { %p2443_p11 = scmp.ne.s32.totalorder %s2852_s10, %s2442_s19  ;;  %p2446_p12 = scmp.lt.u32.totalorder %s2442_s19, %s2852_s10 }
 0xc2b   :  { %p2448_p13 = pnand %p2446_p12, %p2443_p11 }
 0xc2d   :  { %2451 = shalt.err (!%p2448_p13)
}
 0xc2e   :  { %1998 = dma.vmem_to_hbm [thread:$0]  %s1993_s18, 256, %s2852_s10, [#allocation4], %s2464_s25, %s2464_s25, %s2465_s26  }
 0xc2f   :  { %2460 = dma.done.wait [#allocation4], 256  }
 0xc30   :  { %2461 = vsyncadd [#allocation4], 4294967040 }
 0xc31   :  { %2002 = vsyncpa [#allocation3], 1 }
 0xc32   :  { %2003 = vsyncpa [#allocation6], 1 }
 0xc33   :  { %2004 = vsyncpa [#allocation9], 1 }
 0xc34   :  { %2005 = vsyncpa [#allocation12], 1 }
 0xc35   :  { %2006 = vsyncpa [#allocation4], 1 }

</bundles_post_ra>
